<compile_context>
chip_gen: v5e
topology: v5e:2x2
jax: 0.10.0
libtpu: 0.0.40
codegen_flags: <defaults>
</compile_context>

<pallas_src>
from functools import partial

import jax
import jax.numpy as jnp
from jax.experimental import pallas as pl
from jax.experimental.pallas import tpu as pltpu

R1 = 1.1               # exponent from newLoss.__init__
LANE = 128
SUBLANE = 8
MAX_BLK_ROWS = 4096    # 4096*128 f32 = 2 MiB per input block
CHUNK_ROWS = 1024      # in-kernel reduce chunk (bounds VMEM temporaries)

# TODO(synk): r2, offset and compare_mut exist in the module but never affect forward().


def _ceil_div(a, b):
    return -(-a // b)


def _round_up(a, b):
    return _ceil_div(a, b) * b


def _sublane_align(dtype):
    # Min second-minor tile per dtype: 8 (f32), 16 (bf16/f16), 32 (int8/fp8).
    return {4: 8, 2: 16, 1: 32}.get(jnp.dtype(dtype).itemsize, 8)


def _y_of_delx(del_x, r1, valid=None):
    # Folded: (d*255)**r1 / 255 * d == 255**(r1-1) * d**(r1+1), computed as
    # exp((r1+1)*log(d)), guarded so d == 0 (and masked lanes, incl. garbage
    # in unfetched boundary rows) contribute exactly 0.
    c = float(255.0 ** (r1 - 1.0))
    e = float(r1 + 1.0)
    nz = del_x > 0.0
    if valid is not None:
        nz = jnp.logical_and(nz, valid)
    safe = jnp.where(nz, del_x, 1.0)
    return jnp.where(nz, c * jnp.exp(e * jnp.log(safe)), 0.0)


def _new_loss_kernel(x_ref, t_ref, o_ref, acc_ref, *, r1, blk_rows, chunk_rows,
                     steps, rows_valid, need_mask):
    p = pl.program_id(0)
    i = pl.program_id(1)

    @pl.when(i == 0)
    def _():
        acc_ref[...] = jnp.zeros_like(acc_ref)

    # Virtual (unclamped) first-row index of this block, used only for masking.
    row_base = (p * steps + i) * blk_rows

    def accumulate(x, t, chunk_row0):
        del_x = jnp.abs(x.astype(jnp.float32) - t.astype(jnp.float32))
        valid = None
        if need_mask:
            rid = row_base + chunk_row0 + jax.lax.broadcasted_iota(
                jnp.int32, del_x.shape, 0)
            valid = rid < rows_valid
        y = _y_of_delx(del_x, r1, valid)
        # Fold the chunk into the resident (8,128) accumulator: pure VPU adds,
        # no cross-lane work until the final step.
        acc_ref[...] += y.reshape(-1, SUBLANE, LANE).sum(axis=0)

    n_chunks = blk_rows // chunk_rows
    if n_chunks == 1:
        accumulate(x_ref[...], t_ref[...], 0)
    else:
        def body(ci, carry):
            r0 = pl.multiple_of(ci * chunk_rows, chunk_rows)
            accumulate(x_ref[pl.ds(r0, chunk_rows), :],
                       t_ref[pl.ds(r0, chunk_rows), :],
                       ci * chunk_rows)
            return carry
        jax.lax.fori_loop(0, n_chunks, body, 0, unroll=True)

    @pl.when(i == pl.num_programs(1) - 1)
    def _():
        # Single cross-sublane reduce at the very end -> lane-dense (1,128).
        o_ref[...] = jnp.sum(acc_ref[...], axis=0, keepdims=True)


def new_loss(inp, target, r1=R1):
    """Pallas implementation of newLoss().forward(input, target)."""
    xf = inp.reshape(-1)
    tf = target.reshape(-1)
    n = xf.shape[0]
    if n == 0:
        return jnp.float32(0.0)

    row_align = max(_sublane_align(xf.dtype), _sublane_align(tf.dtype))

    rem = n % LANE
    n_main = n - rem
    rows_needed = n_main // LANE

    # <128-element flat remainder: plain jnp (tiny), avoids padding/copying
    # the whole input.
    tail = jnp.float32(0.0)
    if rem:
        d = jnp.abs(xf[n_main:].astype(jnp.float32) -
                    tf[n_main:].astype(jnp.float32))
        tail = jnp.sum(_y_of_delx(d, r1))

    if rows_needed < row_align:
        # Tiny input: not worth a kernel launch.
        if n_main:
            d = jnp.abs(xf[:n_main].astype(jnp.float32) -
                        tf[:n_main].astype(jnp.float32))
            tail = tail + jnp.sum(_y_of_delx(d, r1))
        return tail

    # Lane-dense main slab. When n % 128 == 0 this is a pure reshape (no copy).
    # TODO(synk): for rem != 0 the prefix slice may materialize a copy in XLA.
    xm = (xf if rem == 0 else xf[:n_main]).reshape(rows_needed, LANE)
    tm = (tf if rem == 0 else tf[:n_main]).reshape(rows_needed, LANE)

    # Shard row blocks across 2 TensorCores (v7x) when there is enough work;
    # on single-TC v5e/v6e the parallel axis simply runs sequentially.
    num_partials = 2 if rows_needed >= 2 * row_align else 1
    per_partial = _ceil_div(rows_needed, num_partials)
    blk_rows = min(MAX_BLK_ROWS,
                   _round_up(per_partial, row_align),
                   (rows_needed // row_align) * row_align)  # never exceed array
    if blk_rows > CHUNK_ROWS:
        blk_rows = _round_up(blk_rows, CHUNK_ROWS)
    chunk_rows = min(CHUNK_ROWS, blk_rows)
    steps = _ceil_div(rows_needed, num_partials * blk_rows)
    num_blocks_real = _ceil_div(rows_needed, blk_rows)
    need_mask = (num_partials * steps * blk_rows) != rows_needed

    if num_partials * steps > num_blocks_real:
        # Some virtual blocks lie entirely past the array: clamp their index
        # so the DMA stays in-bounds; the in-kernel mask (based on the
        # unclamped row base) zeroes their contribution.
        last_blk = num_blocks_real - 1

        def in_idx(p, i):
            return (jnp.minimum(p * steps + i, last_blk), 0)
    else:
        def in_idx(p, i):
            return (p * steps + i, 0)

    bytes_in = (xm.dtype.itemsize + tm.dtype.itemsize) * n_main
    cost = pl.CostEstimate(
        flops=10 * n_main,
        transcendentals=2 * n_main,                  # exp + log per element
        bytes_accessed=bytes_in + 4 * num_partials * LANE,
    )

    partials = pl.pallas_call(
        partial(_new_loss_kernel, r1=r1, blk_rows=blk_rows,
                chunk_rows=chunk_rows, steps=steps,
                rows_valid=rows_needed, need_mask=need_mask),
        out_shape=jax.ShapeDtypeStruct((1, num_partials * LANE), jnp.float32),
        grid_spec=pltpu.PrefetchScalarGridSpec(
            num_scalar_prefetch=0,
            grid=(num_partials, steps),
            in_specs=[
                pl.BlockSpec((blk_rows, LANE), in_idx),
                pl.BlockSpec((blk_rows, LANE), in_idx),
            ],
            out_specs=pl.BlockSpec((1, LANE), lambda p, i: (0, p)),
            scratch_shapes=[pltpu.VMEM((SUBLANE, LANE), jnp.float32)],
        ),
        compiler_params=pltpu.CompilerParams(
            dimension_semantics=("parallel", "arbitrary"),
            vmem_limit_bytes=32 * 1024 * 1024,
        ),
        cost_estimate=cost,
    )(xm, tm)

    # Tiny final reduce over per-lane partials (1, num_partials*128).
    return jnp.sum(partials) + tail


def _reference(inp, target, r1=R1):
    del_x = jnp.abs(inp.astype(jnp.float32) - target.astype(jnp.float32))
    y = (del_x * 255.0) ** r1 / 255.0 * del_x
    return jnp.sum(y)


if __name__ == "__main__":
    key = jax.random.PRNGKey(0)
    k1, k2 = jax.random.split(key)
    # small NCHW-like shapes consistent with an image loss
    x = jax.random.uniform(k1, (2, 4, 16, 16), dtype=jnp.float32)
    t = jax.random.uniform(k2, (2, 4, 16, 16), dtype=jnp.float32)

    loss = jax.block_until_ready(new_loss(x, t))
    ref = jax.block_until_ready(_reference(x, t))

    assert jnp.allclose(loss, ref, rtol=1e-4, atol=1e-4), (loss, ref)
    print("KERNEL_OK")
</pallas_src>

<mosaic_0001>
module attributes {stable_mosaic.version = 11 : i64} {
  func.func @_new_loss_kernel(%arg0: i32, %arg1: i32, %arg2: memref<8x128xf32, #tpu.memory_space<vmem>>, %arg3: memref<8x128xf32, #tpu.memory_space<vmem>>, %arg4: memref<1x128xf32, #tpu.memory_space<vmem>>, %arg5: memref<8x128xf32, #tpu.memory_space<vmem>>) attributes {dimension_semantics = [#tpu.dimension_semantics<parallel>, #tpu.dimension_semantics<arbitrary>], iteration_bounds = array<i64: 2, 1>, scalar_prefetch = 0 : i64, scratch_operands = 1 : i64, tpu.core_type = #tpu.core_type<tc>, window_params = [{transform_indices = @transform_0, window_bounds = array<i64: 8, 128>}, {transform_indices = @transform_1, window_bounds = array<i64: 8, 128>}, {transform_indices = @transform_2, window_bounds = array<i64: 1, 128>}]} {
    %c0_i32 = arith.constant 0 : i32
    %0 = arith.cmpi eq, %arg1, %c0_i32 : i32
    %1 = arith.extui %0 : i1 to i32
    %c0_i32_0 = arith.constant 0 : i32
    %2 = arith.cmpi ne, %1, %c0_i32_0 : i32
    scf.if %2 {
      %cst_15 = arith.constant 0.000000e+00 : f32
      %27 = vector.broadcast %cst_15 : f32 to vector<8x128xf32>
      %c0_16 = arith.constant 0 : index
      %c0_17 = arith.constant 0 : index
      %28 = vector.load %arg5[%c0_16, %c0_17] : memref<8x128xf32, #tpu.memory_space<vmem>>, vector<8x128xf32>
      tpu.vector_store %arg5[%c0_16, %c0_17], %27 {strides = array<i32>} : memref<8x128xf32, #tpu.memory_space<vmem>>, vector<8x128xf32>,
    } else {
    }
    %c0 = arith.constant 0 : index
    %c0_1 = arith.constant 0 : index
    %3 = vector.load %arg2[%c0, %c0_1] : memref<8x128xf32, #tpu.memory_space<vmem>>, vector<8x128xf32>
    %c0_2 = arith.constant 0 : index
    %c0_3 = arith.constant 0 : index
    %4 = vector.load %arg3[%c0_2, %c0_3] : memref<8x128xf32, #tpu.memory_space<vmem>>, vector<8x128xf32>
    %5 = arith.subf %3, %4 : vector<8x128xf32>
    %6 = math.absf %5 : vector<8x128xf32>
    %cst = arith.constant 0.000000e+00 : f32
    %7 = vector.broadcast %cst : f32 to vector<8x128xf32>
    %8 = arith.cmpf ogt, %6, %7 : vector<8x128xf32>
    %cst_4 = arith.constant 1.000000e+00 : f32
    %9 = vector.broadcast %cst_4 : f32 to vector<8x128xf32>
    %10 = arith.select %8, %6, %9 : vector<8x128xi1>, vector<8x128xf32>
    %11 = math.log %10 : vector<8x128xf32>
    %cst_5 = arith.constant 2.100000e+00 : f32
    %12 = vector.broadcast %cst_5 : f32 to vector<8x128xf32>
    %13 = arith.mulf %12, %11 : vector<8x128xf32>
    %14 = math.exp %13 : vector<8x128xf32>
    %cst_6 = arith.constant 1.74041986 : f32
    %15 = vector.broadcast %cst_6 : f32 to vector<8x128xf32>
    %16 = arith.mulf %15, %14 : vector<8x128xf32>
    %cst_7 = arith.constant 0.000000e+00 : f32
    %17 = vector.broadcast %cst_7 : f32 to vector<8x128xf32>
    %18 = arith.select %8, %16, %17 : vector<8x128xi1>, vector<8x128xf32>
    %c0_8 = arith.constant 0 : index
    %c0_9 = arith.constant 0 : index
    %19 = vector.load %arg5[%c0_8, %c0_9] : memref<8x128xf32, #tpu.memory_space<vmem>>, vector<8x128xf32>
    %20 = vector.shape_cast %18 : vector<8x128xf32> to vector<1x8x128xf32>
    %cst_10 = arith.constant dense<0.000000e+00> : vector<8x128xf32>
    %21 = vector.multi_reduction <add>, %20, %cst_10 [0] : vector<1x8x128xf32> to vector<8x128xf32>
    %22 = arith.addf %19, %21 : vector<8x128xf32>
    %c0_11 = arith.constant 0 : index
    %c0_12 = arith.constant 0 : index
    %23 = vector.load %arg5[%c0_11, %c0_12] : memref<8x128xf32, #tpu.memory_space<vmem>>, vector<8x128xf32>
    tpu.vector_store %arg5[%c0_11, %c0_12], %22 {strides = array<i32>} : memref<8x128xf32, #tpu.memory_space<vmem>>, vector<8x128xf32>,
    %c0_i32_13 = arith.constant 0 : i32
    %24 = arith.cmpi eq, %arg1, %c0_i32_13 : i32
    %25 = arith.extui %24 : i1 to i32
    %c0_i32_14 = arith.constant 0 : i32
    %26 = arith.cmpi ne, %25, %c0_i32_14 : i32
    scf.if %26 {
      %c0_15 = arith.constant 0 : index
      %c0_16 = arith.constant 0 : index
      %27 = vector.load %arg5[%c0_15, %c0_16] : memref<8x128xf32, #tpu.memory_space<vmem>>, vector<8x128xf32>
      %cst_17 = arith.constant dense<0.000000e+00> : vector<128xf32>
      %28 = vector.multi_reduction <add>, %27, %cst_17 [0] : vector<8x128xf32> to vector<128xf32>
      %29 = vector.shape_cast %28 : vector<128xf32> to vector<1x128xf32>
      %c0_18 = arith.constant 0 : index
      %c0_19 = arith.constant 0 : index
      %30 = vector.load %arg4[%c0_18, %c0_19] : memref<1x128xf32, #tpu.memory_space<vmem>>, vector<1x128xf32>
      tpu.vector_store %arg4[%c0_18, %c0_19], %29 {strides = array<i32>} : memref<1x128xf32, #tpu.memory_space<vmem>>, vector<1x128xf32>,
    } else {
    }
    return
  }
  func.func @transform_0(%arg0: i32, %arg1: i32) -> (i32, i32) {
    %c1_i32 = arith.constant 1 : i32
    %0 = arith.muli %arg0, %c1_i32 : i32
    %1 = arith.addi %0, %arg1 : i32
    %c0_i32 = arith.constant 0 : i32
    %c0_i32_0 = arith.constant 0 : i32
    return %1, %c0_i32 : i32, i32
  }
  func.func @transform_1(%arg0: i32, %arg1: i32) -> (i32, i32) {
    %c1_i32 = arith.constant 1 : i32
    %0 = arith.muli %arg0, %c1_i32 : i32
    %1 = arith.addi %0, %arg1 : i32
    %c0_i32 = arith.constant 0 : i32
    %c0_i32_0 = arith.constant 0 : i32
    return %1, %c0_i32 : i32, i32
  }
  func.func @transform_2(%arg0: i32, %arg1: i32) -> (i32, i32) {
    %c0_i32 = arith.constant 0 : i32
    %c0_i32_0 = arith.constant 0 : i32
    return %c0_i32, %arg0 : i32, i32
  }
}

</mosaic_0001>

<bundles_post_ra>
// kernel: tpu_custom_call.1
= control target key start
LH: loop header
LB: loop body
LE: loop exit
PB: predicated region body
PF: predicated region fallthrough
CT: control target
= control target key end

     0   :  { %7 = vsyncpa [#allocation4], 0  ;;  %s740_s0 = inlined_call_operand.hbm [shape: f32[16,128], index: 0, kind: input, shape index: {}]   ;;  %s741_s1 = inlined_call_operand.hbm [shape: f32[16,128], index: 1, kind: input, shape index: {}]   ;;  %s742_s2 = inlined_call_operand.hbm [shape: f32[1,256], index: 2, kind: output, shape index: {}]  }
   0x1   :  { %9 = vsyncpa [#allocation4 + $0x1], 0 }
   0x2   :  { %10 = vsyncpa [#allocation7], 0 }
   0x3   :  { %12 = vsyncpa [#allocation7 + $0x1], 0 }
   0x4   :  { %13 = vsyncpa [#allocation5], 0 }
   0x5   :  { %15 = vsyncpa [#allocation5 + $0x1], 0  ;;  %s611_s9 = smov 0   ;;  %s613_s10 = smov 0  }
   0x6   :  { %s615_s11 = smov 0   ;;  %s617_s12 = smov 0  }
   0x7   :  { %s619_s13 = smov 0   ;;  %s621_s14 = smov 0  }
   0x8 LB: > { %s364_s15 = sadd.s32 4294967295, %s594_s14   ;;  %s365_s16 = sadd.s32 4294967294, %s594_s14   ;;  %s594_s14 = sphi %s621_s14, %s21_s14   ;;  %s590_s13 = sphi %s619_s13, %s751_s13   ;;  %s586_s12 = sphi %s617_s12, %s750_s12   ;;  %s582_s11 = sphi %s615_s11, %s749_s11   ;;  %s578_s10 = sphi %s613_s10, %s748_s10   ;;  %s574_s9 = sphi %s611_s9, %s747_s9  }
   0x9   : > { %s33_s17 = sadd.s32 1, %s590_s13  ;;  %s42_s18 = sadd.s32 1, %s582_s11 }
   0xa   : > { %p35_p0 = scmp.ge.s32.totalorder %s33_s17, 2  ;;  %p49_p1 = scmp.ne.s32.totalorder %s582_s11, %s578_s10 }
   0xb   : > { %p50_p2 = scmp.eq.s32.totalorder %s594_s14, 0  ;;  %p55_p3 = scmp.ne.s32.totalorder %s578_s10, %s574_s9 }
   0xc   : > { %s753_s17 = smov (%p35_p0, %s33_s17), 0  ;;  %p56_p5 = scmp.eq.s32.totalorder %s364_s15, 0 }
   0xd   : > { %p652_p4 = por %p50_p2, %p49_p1  ;;  %s39_s20 = ssub.s32 %s590_s13, %s753_s17 }
   0xe   : > { %p107_p6 = scmp.eq.s32.totalorder %s364_s15, 1  ;;  %p40_p7 = scmp.eq.s32.totalorder %s39_s20, 0 }
   0xf   : > { %p658_p8 = por %p56_p5, %p55_p3  ;;  %p113_p10 = scmp.eq.s32.totalorder %s365_s16, 1 }
  0x10   : > { %p662_p9 = por %p107_p6, %p49_p1  ;;  %p367_p12 = scmp.ge.s32.totalorder %s594_s14, 2 }
  0x11   : > { %s667_s23 = scalar_select %p40_p7, %s582_s11, %s42_s18  }
  0x12   : > { %p669_p11 = por %p113_p10, %p55_p3  ;;  %p394_p13 = scmp.lt.s32.totalorder %s594_s14, 2 }
  0x13   : > { %s133_s25 = sand.u32 1, %s582_s11   ;;  %s369_s27 = sshll.u32 %s590_s13, 3 }
  0x14   : > { %s368_s26 = sshll.u32 %s133_s25, 3  ;;  %s142_s30 = scalar_lea.hbm %s740_s0, %s369_s27 }
  0x15   : > { %s137_s3 = scalar_lea.vmem [#allocation3], %s368_s26  ;;  %s144_s5 = sshll.u32 %s142_s30, 4  ;;  %s145_s5 = int_to_ptr.hbm [resolvable:$true] %s144_s5 }
  0x16   : > { %s146_s4 = sshll.u32 %s137_s3, 4  ;;  %p384_p0 = pnand %p394_p13, %p652_p4  ;;  %s147_s4 = int_to_ptr.vmem [resolvable:$true] %s146_s4 }
  0x17   : > { %p372_p1 = scmp.ge.s32.totalorder %s594_s14, 1  ;;  %p171_p2 = scmp.lt.s32.totalorder %s594_s14, 3 }
  0x18   : > { %s134_s6 = scalar_lea.sflag [#allocation4], %s133_s25  ;;  %s162_s15 = scalar_lea.hbm %s741_s1, %s369_s27 }
  0x19   : > { %386 = dma.hbm_to_vmem [thread:$0]  (!%p384_p0), %s145_s5, 128, %s147_s4, %s134_s6  }
  0x1a   : > { %p172_p3 = pnand %p372_p1, %p171_p2  ;;  %s157_s16 = scalar_lea.vmem [#allocation6], %s368_s26 }
  0x1b   : > { %s166_s18 = sshll.u32 %s157_s16, 4  ;;  %s164_s20 = sshll.u32 %s162_s15, 4  ;;  %s167_s18 = int_to_ptr.vmem [resolvable:$true] %s166_s18  ;;  %s165_s20 = int_to_ptr.hbm [resolvable:$true] %s164_s20 }
  0x1c   : > { %s154_s28 = scalar_lea.sflag [#allocation7], %s133_s25  ;;  %175 = sbr.rel (%p172_p3) target bundleno = 81 (0x51), region = 28 }
  0x1d   : > { %389 = dma.hbm_to_vmem [thread:$0]  (!%p384_p0), %s165_s20, 128, %s167_s18, %s154_s28  }
  0x1e   : > { %s688_s19 = sand.u32 (!%p172_p3), 1, %s578_s10  }
  0x1f   : > { %s373_s29 = sshll.u32 (!%p172_p3), %s688_s19, 3  ;;  %s178_s30 = scalar_lea.sflag (!%p172_p3), [#allocation4], %s688_s19 }
  0x20   : > { %s181_s3 = scalar_lea.vmem (!%p172_p3), [#allocation3], %s373_s29 }
  0x21   : > { %561 = dma.done.wait (%p658_p8), %s178_s30, 128  }
  0x22   : > { %563 = vsyncadd (%p658_p8), %s178_s30, 4294967168  ;;  %s188_s26 = scalar_lea.sflag [#allocation7], %s688_s19  ;;  %s191_s25 = scalar_lea.vmem [#allocation6], %s373_s29 }
  0x23   : > { %565 = dma.done.wait (%p658_p8), %s188_s26, 128  }
  0x24   : > { %567 = vsyncadd (%p658_p8), %s188_s26, 4294967168  ;;  %v224_v0 = vld [vmem:[%s181_s3] sm:$0xff]  ;;  %v225_v1 = vld [vmem:[%s191_s25] sm:$0xff]  ;;  %s261_s4 = scalar_lea.hbm %s742_s2, %s586_s12  ;;  %s216_s5 = scalar_lea.vmem [#allocation8], %s688_s19 }
  0x25   : > { %v226_v2 = vsub.f32 %v224_v0, %v225_v1  ;;  %s263_s6 = sshll.u32 %s216_s5, 4  ;;  %s265_s7 = sshll.u32 %s261_s4, 4  ;;  %s264_s6 = int_to_ptr.vmem [resolvable:$true] %s263_s6  ;;  %s266_s7 = int_to_ptr.hbm [resolvable:$true] %s265_s7 }
  0x26   : > { %s253_s8 = scalar_lea.sflag [#allocation5], %s688_s19  ;;  %s522_s15 = sshra.s32 %s266_s7, 4  ;;  %s523_s15 = int_to_ptr.hbm [resolvable:$true] %s522_s15 }
  0x27   : > { %v227_v3 = vand.u32 2147483647, %v226_v2  ;;  %s524_s16 = scalar_lea.hbm %s523_s15, 1  ;;  %s528_s12 = scalar_lea.hbm %s742_s2, 2 }
  0x28   : > { %p525_p4 = scmp.ne.s32.totalorder %s523_s15, %s524_s16  ;;  %p529_p7 = scmp.lt.s32.totalorder %s523_s15, %s742_s2 }
  0x29   : > { %vm228_vm0 = vcmp.gt.f32.partialorder %v227_v3, 0.0  ;;  %p530_p8 = scmp.lt.s32.totalorder %s528_s12, %s524_s16 }
  0x2a   : > { %v229_v4 = vsel %vm228_vm0, %v227_v3, 1.0  ;;  %p526_p5 = pnand %p525_p4, %p662_p9 }
  0x2b   : > { %444 = vlog2.f32 %v229_v4  ;;  %p531_p10 = por %p530_p8, %p529_p7 }
  0x2c   : > { %p527_p6 = pneg %p526_p5 }
  0x2e   : > { %p532_p13 = pnand %p531_p10, %p527_p6 }
  0x31   : > { %v445_v5 = vpop.eup %444 }
  0x32   : > { %v231_v6 = vmul.f32 0.6931472, %v445_v5 }
  0x34   : > { %v232_v7 = vmul.f32 2.1, %v231_v6 }
  0x36   : > { %v233_v8 = vmul.f32 1.442695, %v232_v7 }
  0x38   : > { %446 = vpow2.f32 %v233_v8 }
  0x3e   : > { %v447_v9 = vpop.eup %446 }
  0x3f   : > { %v235_v10 = vmul.f32 1.7404199, %v447_v9 }
  0x41   : > { %v236_v11 = vsel %vm228_vm0, %v235_v10, 0.0 }
  0x42   : > { %v245_v12 = vrot.slane %v236_v11, 4 }
  0x44   : > { %v246_v13 = vadd.f32 %v245_v12, %v236_v11 }
  0x46   : > { %v247_v14 = vrot.slane %v246_v13, 2 }
  0x48   : > { %v248_v15 = vadd.f32 %v247_v14, %v246_v13 }
  0x4a   : > { %v249_v16 = vrot.slane %v248_v15, 1 }
  0x4c   : > { %v250_v17 = vadd.f32 %v249_v16, %v248_v15 }
  0x4e   : > { %251 = vst [vmem:[%s216_s5] sm:$0x1] %v250_v17 }
  0x4f   : > { %535 = shalt.err (!%p532_p13)
}
  0x50   : > { %381 = dma.vmem_to_hbm [thread:$0]  (%p662_p9), %s264_s6, 16, %s266_s7, %s253_s8  }
  0x51 PF: > { %s277_s19 = sand.u32 1, %s574_s9   ;;  %p391_p0 = pnand %p367_p12, %p669_p11 }
  0x52   : > { %s278_s30 = scalar_lea.sflag [#allocation5], %s277_s19 }
  0x53   : > { %p392_p1 = pneg %p391_p0 }
  0x55   : > { %569 = dma.done.wait (%p392_p1), %s278_s30, 16  }
  0x56   : > { %571 = vsyncadd (%p392_p1), %s278_s30, 4294967280  ;;  %s21_s14 = sadd.s32 1, %s594_s14   ;;  %s747_s9 = smov %s578_s10 }
  0x57   : > { %p18_p2 = scmp.ge.s32.totalorder %s21_s14, 4   ;;  %s748_s10 = smov %s582_s11 }
  0x58   : > { %s749_s11 = smov %s667_s23  ;;  %s750_s12 = smov %s590_s13 }
  0x59   : > { %s751_s13 = smov %s753_s17  ;;  %20 = sbr.rel (!%p18_p2) target bundleno = 8 (0x8), region = 94 }
  0x5e   :  { %283 = vsyncpa [#allocation4], 1 }
  0x5f   :  { %285 = vsyncpa [#allocation4 + $0x1], 1 }
  0x60   :  { %286 = vsyncpa [#allocation7], 1 }
  0x61   :  { %288 = vsyncpa [#allocation7 + $0x1], 1 }
  0x62   :  { %289 = vsyncpa [#allocation5], 1 }
  0x63   :  { %291 = vsyncpa [#allocation5 + $0x1], 1 }

</bundles_post_ra>
